<compile_context>
chip_gen: v6e
topology: v6e:2x2x1
jax: 0.10.0
libtpu: 0.0.40
codegen_flags: <defaults>
</compile_context>

<pallas_src>
import functools

import jax
import jax.numpy as jnp
from jax import lax
from jax.experimental import pallas as pl
from jax.experimental.pallas import tpu as pltpu


# ----------------------------- Pallas kernel --------------------------------
def _mixture_pointwise_kernel(x_ref, w_ref, o_ref):
    """One (batch-block, HW-tile) grid step of the 1x1 conv.

    x_ref : (NB, Cin, THW)   input channels x pixel tile (lane axis = pixels)
    w_ref : (Cout, Cin)      mixed conv weight (1x1 kernel squeezed)
    o_ref : (NB, Cout, THW)  output channels x pixel tile
    """
    w = w_ref[...]
    # NB is a small static block count; the loop unrolls at trace time. Doing
    # per-batch dot_general keeps (Cout, THW) lane-dense and avoids the
    # sublane transpose a batched einsum ('oc,bcp->bop') would introduce.
    for b in range(x_ref.shape[0]):
        o_ref[b] = lax.dot_general(
            w, x_ref[b],
            dimension_numbers=(((1,), (0,)), ((), ())),
            preferred_element_type=jnp.float32,
        ).astype(o_ref.dtype)


# ----------------------------- tiling planner --------------------------------
def _vmem_capacity_bytes():
    try:
        info = pltpu.get_tpu_info()
        cap = getattr(info, "vmem_capacity_bytes", None)
        if cap:
            return int(cap)
    except Exception:
        pass
    return 64 * 1024 * 1024  # conservative fallback (v7x per-TC VMEM)


def _plan_blocks(n, hw, cin, cout, itemsize):
    """Pick (NB, THW, vmem_limit_bytes) for the grid."""
    vmem_cap = _vmem_capacity_bytes()
    # Never request the full physical VMEM (on v7x that is the whole per-TC
    # 64 MiB); keep ~16 MiB headroom for Mosaic internals, cap at 64 MiB.
    vmem_limit = min(vmem_cap - 16 * 1024 * 1024, 64 * 1024 * 1024)
    # Double-buffered input + output blocks must fit well under the limit
    # (the (Cout, Cin) weight block is tiny).
    tile_budget = vmem_limit // 2
    # Larger lane targets on 128 MiB parts (v5e/v6e); smaller on v7x.
    target_lanes = 16384 if vmem_cap >= 96 * 1024 * 1024 else 4096

    # Double-buffered in+out bytes per lane per batch element.
    per_lane_bytes = 2 * itemsize * (cin + cout)

    # --- HW tile: 128-aligned (or full extent when tiny); tail handled by cdiv.
    if hw <= 128:
        thw = hw
    else:
        cap_lanes = max(128, (tile_budget // per_lane_bytes) // 128 * 128)
        thw = max(128, min(target_lanes, cap_lanes, (hw // 128) * 128))
    n_hw = pl.cdiv(hw, thw)

    # --- Batch folding for small feature maps: fewer grid steps / longer DMAs,
    #     but keep >= 2 total steps so v7x megacore can use both TensorCores.
    nb = 1
    while (nb * 2 <= n
           and nb * thw < target_lanes
           and (nb * 2) * thw * per_lane_bytes <= tile_budget
           and pl.cdiv(n, nb * 2) * n_hw >= 2):
        nb *= 2
    return nb, thw, int(vmem_limit)


def _pointwise_conv_mixture(x3, w_mix):
    """x3: (N, Cin, HW), w_mix: (Cout, Cin) -> (N, Cout, HW)."""
    n, cin, hw = x3.shape
    cout = w_mix.shape[0]
    nb, thw, vmem_limit = _plan_blocks(n, hw, cin, cout, x3.dtype.itemsize)

    return pl.pallas_call(
        _mixture_pointwise_kernel,
        out_shape=jax.ShapeDtypeStruct((n, cout, hw), x3.dtype),
        grid_spec=pltpu.PrefetchScalarGridSpec(
            num_scalar_prefetch=0,
            grid=(pl.cdiv(n, nb), pl.cdiv(hw, thw)),
            in_specs=[
                pl.BlockSpec((nb, cin, thw), lambda b, t: (b, 0, t)),
                # Full (tiny) mixed weight, resident across the whole grid.
                pl.BlockSpec((cout, cin), lambda b, t: (0, 0)),
            ],
            out_specs=pl.BlockSpec((nb, cout, thw), lambda b, t: (b, 0, t)),
        ),
        compiler_params=pltpu.CompilerParams(
            dimension_semantics=("parallel", "parallel"),
            vmem_limit_bytes=vmem_limit,
        ),
    )(x3, w_mix)


# ----------------------------- jitted forward --------------------------------
@functools.partial(jax.jit, static_argnames=("in_channels", "use_argmax"))
def _dynamic_in_conv_mixture_fwd(x, weight, mix_weights, *, in_channels,
                                 use_argmax):
    """x: (N, Cin, H, W) NCHW; weight: (Cout, Cin, 1, 1); mix: (num_choices,)."""
    n, c, h, w = x.shape
    max_in = max(in_channels)
    ch = jnp.asarray(in_channels)
    idx = jnp.arange(max_in)
    mask = (idx[None, :] < ch[:, None]).astype(jnp.float32)   # (choices, max_in)
    if use_argmax:
        s = mask[jnp.argmax(mix_weights)]
    else:
        s = jnp.sum(mix_weights.astype(jnp.float32)[:, None] * mask, axis=0)
    # Fold the mixture into the weight once (grid-invariant, fuses under jit)
    # and match the activation dtype so the kernel matmul stays on the native
    # MXU path (no per-element promote); accumulation is still f32 in-kernel.
    w_mix = (weight[:, :, 0, 0].astype(jnp.float32) * s[None, :]).astype(x.dtype)

    x3 = x.reshape(n, c, h * w)                                # free reshape
    y3 = _pointwise_conv_mixture(x3, w_mix)                    # (N, Cout, HW)
    return y3.reshape(n, w_mix.shape[0], h, w)                 # NCHW, free


# ------------------------------ Module wrapper -------------------------------
class DynamicInConv2dMixture:
    """JAX/Pallas port. kernel_size=1, stride=1, dilation=1 (module defaults)."""

    def __init__(self, in_channels_list, out_channels, kernel_size=1,
                 stride=1, dilation=1, key=None):
        assert kernel_size == 1 and stride == 1 and dilation == 1, \
            "Pallas port implements the module defaults (1x1, stride 1)."
        # TODO(synk): general kernel_size/stride would need an im2col or halo path.
        self.in_channels_list = list(in_channels_list)
        self.out_channels = out_channels
        self.kernel_size = kernel_size
        self.stride = stride
        self.dilation = dilation
        max_in = max(self.in_channels_list)
        if key is None:
            key = jax.random.PRNGKey(0)
        # nn.Conv2d weight shape: (out_channels, max_in, k, k); deterministic init.
        self.weight = jax.random.normal(
            key, (out_channels, max_in, kernel_size, kernel_size), jnp.float32
        ) * 0.1

    def __call__(self, x, weights, use_argmax=False):
        # x: (N, C_in, H, W) NCHW, matching F.conv2d. (bf16 activations are
        # supported and halve HBM traffic for this mem-bound op.)
        return _dynamic_in_conv_mixture_fwd(
            x, self.weight, jnp.asarray(weights),
            in_channels=tuple(self.in_channels_list),
            use_argmax=bool(use_argmax),
        )


# ---------------------------------- Main -------------------------------------
if __name__ == "__main__":
    key = jax.random.PRNGKey(0)
    k_w, k_x, k_mix = jax.random.split(key, 3)

    in_channels_list = [2, 3, 4]
    out_channels = 8
    N, C, Hh, Ww = 2, max(in_channels_list), 16, 16

    mod = DynamicInConv2dMixture(in_channels_list, out_channels, key=k_w)

    x = jax.random.normal(k_x, (N, C, Hh, Ww), jnp.float32)
    mix_logits = jax.random.normal(k_mix, (len(in_channels_list),), jnp.float32)
    mix_weights = jax.nn.softmax(mix_logits)

    # Pallas kernel (soft mixture and argmax variants).
    y = jax.block_until_ready(mod(x, mix_weights, use_argmax=False))
    y_arg = jax.block_until_ready(mod(x, mix_weights, use_argmax=True))

    # Pure-JAX reference (mirrors the PyTorch math) for a sanity check.
    def ref(x, weights, use_argmax):
        max_in = max(in_channels_list)
        idx = jnp.arange(max_in)
        ch = jnp.asarray(in_channels_list)
        mask = (idx[None, :] < ch[:, None]).astype(jnp.float32)
        if use_argmax:
            s = mask[jnp.argmax(weights)]
        else:
            s = jnp.sum(weights[:, None] * mask, axis=0)
        w_mix = mod.weight[:, :, 0, 0] * s[None, :]                # (Cout, Cin)
        return jnp.einsum("nchw,oc->nohw", x, w_mix)

    y_ref = ref(x, mix_weights, False)
    y_arg_ref = ref(x, mix_weights, True)

    assert y.shape == (N, out_channels, Hh, Ww)
    assert jnp.allclose(y, y_ref, atol=1e-4, rtol=1e-4)
    assert jnp.allclose(y_arg, y_arg_ref, atol=1e-4, rtol=1e-4)

    print("KERNEL_OK")
</pallas_src>

<mosaic_0001>
module attributes {stable_mosaic.version = 11 : i64} {
  func.func @_mixture_pointwise_kernel(%arg0: i32, %arg1: i32, %arg2: memref<1x4x256xf32, #tpu.memory_space<vmem>>, %arg3: memref<8x4xf32, #tpu.memory_space<vmem>>, %arg4: memref<1x8x256xf32, #tpu.memory_space<vmem>>) attributes {dimension_semantics = [#tpu.dimension_semantics<parallel>, #tpu.dimension_semantics<parallel>], iteration_bounds = array<i64: 2, 1>, scalar_prefetch = 0 : i64, scratch_operands = 0 : i64, tpu.core_type = #tpu.core_type<tc>, window_params = [{transform_indices = @transform_0, window_bounds = array<i64: 1, 4, 256>}, {pipeline_mode = #tpu.pipeline_mode<synchronous>, transform_indices = @transform_1, window_bounds = array<i64: 8, 4>}, {transform_indices = @transform_2, window_bounds = array<i64: 1, 8, 256>}]} {
    %c0 = arith.constant 0 : index
    %c0_0 = arith.constant 0 : index
    %0 = vector.load %arg3[%c0, %c0_0] : memref<8x4xf32, #tpu.memory_space<vmem>>, vector<8x4xf32>
    %c0_1 = arith.constant 0 : index
    %c0_2 = arith.constant 0 : index
    %c0_3 = arith.constant 0 : index
    %1 = vector.load %arg2[%c0_1, %c0_2, %c0_3] : memref<1x4x256xf32, #tpu.memory_space<vmem>>, vector<1x4x256xf32>
    %2 = vector.shape_cast %1 : vector<1x4x256xf32> to vector<4x256xf32>
    %cst = arith.constant dense<0.000000e+00> : vector<8x256xf32>
    %3 = tpu.matmul %0, %2, %cst {dimension_numbers = #tpu.dot_dimension_numbers<[1], [0], [0], [1], [0, 0, 1, 1], [], []>} : vector<8x4xf32>, vector<4x256xf32>, vector<8x256xf32> -> vector<8x256xf32>
    %c0_4 = arith.constant 0 : index
    %c0_5 = arith.constant 0 : index
    %c0_6 = arith.constant 0 : index
    %4 = vector.load %arg4[%c0_4, %c0_5, %c0_6] : memref<1x8x256xf32, #tpu.memory_space<vmem>>, vector<1x8x256xf32>
    %5 = vector.shape_cast %4 : vector<1x8x256xf32> to vector<8x256xf32>
    %6 = vector.shape_cast %3 : vector<8x256xf32> to vector<1x8x256xf32>
    tpu.vector_store %arg4[%c0_4, %c0_5, %c0_6], %6 {strides = array<i32>} : memref<1x8x256xf32, #tpu.memory_space<vmem>>, vector<1x8x256xf32>,
    return
  }
  func.func @transform_0(%arg0: i32, %arg1: i32) -> (i32, i32, i32) {
    %c0_i32 = arith.constant 0 : i32
    %c0_i32_0 = arith.constant 0 : i32
    return %arg0, %c0_i32, %arg1 : i32, i32, i32
  }
  func.func @transform_1(%arg0: i32, %arg1: i32) -> (i32, i32) {
    %c0_i32 = arith.constant 0 : i32
    %c0_i32_0 = arith.constant 0 : i32
    %c0_i32_1 = arith.constant 0 : i32
    return %c0_i32, %c0_i32_0 : i32, i32
  }
  func.func @transform_2(%arg0: i32, %arg1: i32) -> (i32, i32, i32) {
    %c0_i32 = arith.constant 0 : i32
    %c0_i32_0 = arith.constant 0 : i32
    return %arg0, %c0_i32, %arg1 : i32, i32, i32
  }
}

</mosaic_0001>

<bundles_post_ra>
// kernel: _dynamic_in_conv_mixture_fwd.1
= control target key start
LH: loop header
LB: loop body
LE: loop exit
PB: predicated region body
PF: predicated region fallthrough
CT: control target
= control target key end

     0   :  { %s438_s9 = smov 0   ;;  %s440_s10 = smov 0   ;;  %s471_s0 = inlined_call_operand.vmem [shape: f32[2,4,256], index: 0, kind: input, shape index: {}]   ;;  %s472_s1 = inlined_call_operand.vmem [shape: f32[8,4], index: 1, kind: input, shape index: {}]   ;;  %s473_s2 = inlined_call_operand.vmem [shape: f32[2,8,256], index: 2, kind: output, shape index: {}]  }
   0x1   :  { %s442_s11 = smov 0  }
   0x2 LB: > { %s24_s12 = sadd.s32 1, %s416_s10  ;;  %p360_p0 = scmp.ge.s32.totalorder %s420_s11, 1  ;;  %s420_s11 = sphi %s442_s11, %s12_s11   ;;  %s416_s10 = sphi %s440_s10, %s475_s10   ;;  %s412_s9 = sphi %s438_s9, %s474_s9  }
   0x3   : > { %p26_p1 = scmp.ge.s32.totalorder %s24_s12, 2  ;;  %p133_p2 = scmp.lt.s32.totalorder %s420_s11, 3 }
   0x5   : > { %s477_s12 = smov (%p26_p1, %s24_s12), 0  ;;  %p134_p3 = pnand %p360_p0, %p133_p2 }
   0x6   : > { %p164_p4 = scmp.lt.s32.totalorder (!%p134_p3), %s412_s9, 1 }
   0x7   : > { %137 = sbr.rel (%p134_p3) target bundleno = 216 (0xd8), region = 28 }
   0xc   : > { %v422_v0 = vmov 0.0   ;;  %s479_s9 = smov (!%p164_p4, %s412_s9), 1  ;;  %vm191_vm0 = vcmask 1043456   ;;  %v183_v3 = vld [vmem:[%s472_s1] sm:$0xff]  ;;  %vm187_vm1 = vcmask 31744  }
   0xd   : > { %260 = vmatprep.mubr.f32.mxu0 %v422_v0  ;;  %s370_s13 = sshll.u32 %s479_s9, 3  ;;  %s371_s19 = sshll.u32 %s479_s9, 4 }
   0xe   : > { %s171_s16 = scalar_lea.vmem %s471_s0, %s370_s13  ;;  %s181_s22 = scalar_lea.vmem %s473_s2, %s371_s19 }
   0xf   : > { %v184_v1 = vld [vmem:[%s171_s16] sm:$0xff] }
  0x10   : > { %v186_v2 = vcombine.high %v184_v1, %v184_v1 }
  0x12   : > { %365 = vmatprep.subr.msk.mxu0 %vm191_vm0, %v186_v2 }
  0x13   : > { %366 = vmatpush1.msk.msra.mxu0 %vm191_vm0, %v184_v1 }
  0x14   : > { %367 = vmatmul.mubr.msk.f32.vlgmr.msra.gmra.mxu0 %vm187_vm1, %v183_v3 }
  0xd4   : > { %v262_v4 = vpop.f32.mrf.mxu0 }
  0xd5   : > { %267 = vst [vmem:[%s181_s22] sm:$0xff] %v262_v4 }
  0xd6   : > { %v264_v5 = vpop.f32.mrf.mxu0 }
  0xd7   : > { %268 = vst [vmem:[%s181_s22 + $0x8] sm:$0xff] %v264_v5 }
  0xd8 PF: > { %s12_s11 = sadd.s32 1, %s420_s11   ;;  %s474_s9 = smov %s416_s10 }
  0xd9   : > { %p9_p5 = scmp.ge.s32.totalorder %s12_s11, 4   ;;  %s475_s10 = smov %s477_s12 }
  0xdb   :  { %11 = sbr.rel (!%p9_p5) target bundleno = 2 (0x2), region = 58 }

</bundles_post_ra>
